<compile_context>
chip_gen: v7x
topology: tpu7x:2x2x1
jax: 0.10.0
libtpu: 0.0.40
codegen_flags: <defaults>
</compile_context>

<pallas_src>
import functools

import jax
import jax.numpy as jnp
from jax import lax
from jax.experimental import pallas as pl
from jax.experimental.pallas import tpu as pltpu

ALPHA = 0.5
BETA = 1.5
SCALE = 1.0
EPS = 1e-6  # torch.pairwise_distance default eps (added to the difference)


def _pair_dist_loss_kernel(z1_ref, z2_ref, m_ref, out_ref, *,
                           true_b, block_b, inv_b_scale, needs_mask):
    pid = pl.program_id(0)

    @pl.when(pid == 0)
    def _init():
        out_ref[...] = jnp.zeros_like(out_ref)

    # Widen narrow inputs (e.g. bf16) to f32 on the VPU; the DMA stays narrow.
    diff = z1_ref[...].astype(jnp.float32) - z2_ref[...].astype(jnp.float32) + EPS
    dist = jnp.sqrt(jnp.sum(diff * diff, axis=-1, keepdims=True))      # (TB, 1)

    x = -SCALE * (dist - m_ref[...])                                   # (TB, 1)
    # Stable softplus: log(1 + exp(x)) = max(x, 0) + log1p(exp(-|x|))
    per_pair = jnp.maximum(x, 0.0) + jnp.log1p(jnp.exp(-jnp.abs(x)))

    if needs_mask:
        rows = pid * block_b + lax.broadcasted_iota(jnp.int32, per_pair.shape, 0)
        per_pair = jnp.where(rows < true_b, per_pair, 0.0)

    out_ref[...] += jnp.sum(per_pair)

    @pl.when(pid == pl.num_programs(0) - 1)
    def _finalize():
        out_ref[...] = out_ref[...] * inv_b_scale


def _choose_block_b(B, D, itemsize):
    # VMEM footprint ≈ 2 z-inputs × 2 pipeline buffers × TB × D × itemsize.
    # Budget ~24 MiB so the pipeline fits inside v7x's default-scoped VMEM
    # (32 MiB; 64 MiB physical) as well as v5e/v6e.
    budget = 24 * 1024 * 1024
    max_tb = max(8, budget // (4 * D * itemsize))
    tb = min(1024, max_tb, B)
    if tb >= B:
        return B              # single full-extent block is always a valid shape
    return max(8, (tb // 8) * 8)


def pair_dist_loss(z1, z2, s1, s2, f1, f2, *, block_b=None):
    B, D = z1.shape

    # Fold the tiny O(B) side inputs into one margin vector (XLA side, cheap):
    #   margin = |s1 - s2| * (alpha if f1 == f2 else beta)
    fam = jnp.where(f1 == f2, jnp.float32(ALPHA), jnp.float32(BETA))
    margin = (jnp.abs(s1.astype(jnp.float32) - s2.astype(jnp.float32)) * fam)
    margin = margin.reshape(B, 1)

    if block_b is None:
        block_b = _choose_block_b(B, D, jnp.dtype(z1.dtype).itemsize)
    block_b = min(block_b, B)
    if block_b < B:
        block_b = max(8, (block_b // 8) * 8)   # keep sublane alignment
    grid = (pl.cdiv(B, block_b),)
    needs_mask = (B % block_b) != 0

    kernel = functools.partial(
        _pair_dist_loss_kernel,
        true_b=B,
        block_b=block_b,
        inv_b_scale=1.0 / (B * SCALE),
        needs_mask=needs_mask,
    )

    out = pl.pallas_call(
        kernel,
        out_shape=jax.ShapeDtypeStruct((1, 1), jnp.float32),
        grid_spec=pltpu.PrefetchScalarGridSpec(
            num_scalar_prefetch=0,
            grid=grid,
            in_specs=[
                pl.BlockSpec((block_b, D), lambda i: (i, 0)),   # z1 tile
                pl.BlockSpec((block_b, D), lambda i: (i, 0)),   # z2 tile
                pl.BlockSpec((block_b, 1), lambda i: (i, 0)),   # margin tile
            ],
            out_specs=pl.BlockSpec((1, 1), lambda i: (0, 0)),   # resident acc
        ),
        compiler_params=pltpu.CompilerParams(
            dimension_semantics=("arbitrary",),   # reduction axis (accumulator)
            vmem_limit_bytes=32 * 1024 * 1024,
        ),
    )(z1, z2, margin)
    return out[0, 0]


def pair_dist_loss_ref(z1, z2, s1, s2, f1, f2):
    # Pure-JAX reference mirroring the PyTorch module.
    z1 = z1.astype(jnp.float32)
    z2 = z2.astype(jnp.float32)
    dist = jnp.sqrt(jnp.sum((z1 - z2 + EPS) ** 2, axis=-1))
    f = jnp.where(f1 == f2, ALPHA, BETA)
    s = jnp.abs(s1.astype(jnp.float32) - s2.astype(jnp.float32))
    return jnp.mean(jnp.log1p(jnp.exp(-SCALE * (dist - s * f)))) / SCALE


if __name__ == "__main__":
    key = jax.random.PRNGKey(0)

    # Test 1: single-block path (B=8, D=32, f32).
    k1, k2, k3, k4, k5, k6 = jax.random.split(key, 6)
    B, D = 8, 32
    z1 = jax.random.normal(k1, (B, D), dtype=jnp.float32)
    z2 = jax.random.normal(k2, (B, D), dtype=jnp.float32)
    s1 = jax.random.uniform(k3, (B,), dtype=jnp.float32) * 5.0
    s2 = jax.random.uniform(k4, (B,), dtype=jnp.float32) * 5.0
    f1 = jax.random.randint(k5, (B,), 0, 3, dtype=jnp.int32)
    f2 = jax.random.randint(k6, (B,), 0, 3, dtype=jnp.int32)
    loss = pair_dist_loss(z1, z2, s1, s2, f1, f2)
    jax.block_until_ready(loss)
    ref = pair_dist_loss_ref(z1, z2, s1, s2, f1, f2)
    assert jnp.allclose(loss, ref, atol=1e-5, rtol=1e-5), (loss, ref)

    # Test 2: tiled grid + accumulator + masking (B=20 not a multiple of TB=8).
    k1, k2, k3, k4, k5, k6 = jax.random.split(jax.random.PRNGKey(1), 6)
    B, D = 20, 32
    z1 = jax.random.normal(k1, (B, D), dtype=jnp.float32)
    z2 = jax.random.normal(k2, (B, D), dtype=jnp.float32)
    s1 = jax.random.uniform(k3, (B,), dtype=jnp.float32) * 5.0
    s2 = jax.random.uniform(k4, (B,), dtype=jnp.float32) * 5.0
    f1 = jax.random.randint(k5, (B,), 0, 3, dtype=jnp.int32)
    f2 = jax.random.randint(k6, (B,), 0, 3, dtype=jnp.int32)
    loss = pair_dist_loss(z1, z2, s1, s2, f1, f2, block_b=8)
    jax.block_until_ready(loss)
    ref = pair_dist_loss_ref(z1, z2, s1, s2, f1, f2)
    assert jnp.allclose(loss, ref, atol=1e-5, rtol=1e-5), (loss, ref)

    # Test 3: bf16 embeddings stay bf16 across the HBM->VMEM DMA (widened in-kernel).
    k1, k2, k3, k4, k5, k6 = jax.random.split(jax.random.PRNGKey(2), 6)
    B, D = 16, 128
    z1 = jax.random.normal(k1, (B, D), dtype=jnp.bfloat16)
    z2 = jax.random.normal(k2, (B, D), dtype=jnp.bfloat16)
    s1 = jax.random.uniform(k3, (B,), dtype=jnp.float32) * 5.0
    s2 = jax.random.uniform(k4, (B,), dtype=jnp.float32) * 5.0
    f1 = jax.random.randint(k5, (B,), 0, 3, dtype=jnp.int32)
    f2 = jax.random.randint(k6, (B,), 0, 3, dtype=jnp.int32)
    loss = pair_dist_loss(z1, z2, s1, s2, f1, f2, block_b=8)
    jax.block_until_ready(loss)
    ref = pair_dist_loss_ref(z1, z2, s1, s2, f1, f2)
    assert jnp.allclose(loss, ref, atol=1e-5, rtol=1e-4), (loss, ref)

    print("KERNEL_OK")
</pallas_src>

<mosaic_0001>
module attributes {stable_mosaic.version = 11 : i64} {
  func.func @_pair_dist_loss_kernel(%arg0: i32, %arg1: memref<8x32xf32, #tpu.memory_space<vmem>>, %arg2: memref<8x32xf32, #tpu.memory_space<vmem>>, %arg3: memref<8x1xf32, #tpu.memory_space<vmem>>, %arg4: memref<1x1xf32, #tpu.memory_space<vmem>>) attributes {dimension_semantics = [#tpu.dimension_semantics<arbitrary>], iteration_bounds = array<i64: 1>, scalar_prefetch = 0 : i64, scratch_operands = 0 : i64, tpu.core_type = #tpu.core_type<tc>, window_params = [{transform_indices = @transform_0, window_bounds = array<i64: 8, 32>}, {transform_indices = @transform_1, window_bounds = array<i64: 8, 32>}, {transform_indices = @transform_2, window_bounds = array<i64: 8, 1>}, {pipeline_mode = #tpu.pipeline_mode<synchronous>, transform_indices = @transform_3, window_bounds = array<i64: 1, 1>}]} {
    %c0_i32 = arith.constant 0 : i32
    %0 = arith.cmpi eq, %arg0, %c0_i32 : i32
    %1 = arith.extui %0 : i1 to i32
    %c0_i32_0 = arith.constant 0 : i32
    %2 = arith.cmpi ne, %1, %c0_i32_0 : i32
    scf.if %2 {
      %cst_17 = arith.constant 0.000000e+00 : f32
      %35 = vector.broadcast %cst_17 : f32 to vector<1x1xf32>
      %c0_18 = arith.constant 0 : index
      %c0_19 = arith.constant 0 : index
      %36 = vector.load %arg4[%c0_18, %c0_19] : memref<1x1xf32, #tpu.memory_space<vmem>>, vector<1x1xf32>
      tpu.vector_store %arg4[%c0_18, %c0_19], %35 {strides = array<i32>} : memref<1x1xf32, #tpu.memory_space<vmem>>, vector<1x1xf32>,
    } else {
    }
    %c0 = arith.constant 0 : index
    %c0_1 = arith.constant 0 : index
    %3 = vector.load %arg1[%c0, %c0_1] : memref<8x32xf32, #tpu.memory_space<vmem>>, vector<8x32xf32>
    %c0_2 = arith.constant 0 : index
    %c0_3 = arith.constant 0 : index
    %4 = vector.load %arg2[%c0_2, %c0_3] : memref<8x32xf32, #tpu.memory_space<vmem>>, vector<8x32xf32>
    %5 = arith.subf %3, %4 : vector<8x32xf32>
    %cst = arith.constant 9.99999997E-7 : f32
    %6 = vector.broadcast %cst : f32 to vector<8x32xf32>
    %7 = arith.addf %5, %6 : vector<8x32xf32>
    %8 = arith.mulf %7, %7 : vector<8x32xf32>
    %cst_4 = arith.constant dense<0.000000e+00> : vector<8xf32>
    %9 = vector.multi_reduction <add>, %8, %cst_4 [1] : vector<8x32xf32> to vector<8xf32>
    %10 = vector.shape_cast %9 : vector<8xf32> to vector<8x1xf32>
    %11 = math.sqrt %10 : vector<8x1xf32>
    %c0_5 = arith.constant 0 : index
    %c0_6 = arith.constant 0 : index
    %12 = vector.load %arg3[%c0_5, %c0_6] : memref<8x1xf32, #tpu.memory_space<vmem>>, vector<8x1xf32>
    %13 = arith.subf %11, %12 : vector<8x1xf32>
    %cst_7 = arith.constant -1.000000e+00 : f32
    %14 = vector.broadcast %cst_7 : f32 to vector<8x1xf32>
    %15 = arith.mulf %14, %13 : vector<8x1xf32>
    %cst_8 = arith.constant 0.000000e+00 : f32
    %16 = vector.broadcast %cst_8 : f32 to vector<8x1xf32>
    %17 = arith.maximumf %15, %16 : vector<8x1xf32>
    %18 = math.absf %15 : vector<8x1xf32>
    %cst_9 = arith.constant 0.000000e+00 : f32
    %19 = vector.broadcast %cst_9 : f32 to vector<8x1xf32>
    %20 = arith.subf %19, %18 : vector<8x1xf32>
    %21 = math.exp %20 : vector<8x1xf32>
    %22 = math.log1p %21 : vector<8x1xf32>
    %23 = arith.addf %17, %22 : vector<8x1xf32>
    %c0_10 = arith.constant 0 : index
    %c0_11 = arith.constant 0 : index
    %24 = vector.load %arg4[%c0_10, %c0_11] : memref<1x1xf32, #tpu.memory_space<vmem>>, vector<1x1xf32>
    %25 = vector.shape_cast %23 : vector<8x1xf32> to vector<1x8x1xf32>
    %cst_12 = arith.constant dense<0.000000e+00> : vector<1xf32>
    %26 = vector.multi_reduction <add>, %25, %cst_12 [1, 2] : vector<1x8x1xf32> to vector<1xf32>
    %27 = vector.shape_cast %26 : vector<1xf32> to vector<1x1x1xf32>
    %28 = vector.extract %27[0, 0, 0] : f32 from vector<1x1x1xf32>
    %29 = vector.broadcast %28 : f32 to vector<1x1xf32>
    %30 = arith.addf %24, %29 : vector<1x1xf32>
    %c0_13 = arith.constant 0 : index
    %c0_14 = arith.constant 0 : index
    %31 = vector.load %arg4[%c0_13, %c0_14] : memref<1x1xf32, #tpu.memory_space<vmem>>, vector<1x1xf32>
    tpu.vector_store %arg4[%c0_13, %c0_14], %30 {strides = array<i32>} : memref<1x1xf32, #tpu.memory_space<vmem>>, vector<1x1xf32>,
    %c0_i32_15 = arith.constant 0 : i32
    %32 = arith.cmpi eq, %arg0, %c0_i32_15 : i32
    %33 = arith.extui %32 : i1 to i32
    %c0_i32_16 = arith.constant 0 : i32
    %34 = arith.cmpi ne, %33, %c0_i32_16 : i32
    scf.if %34 {
      %c0_17 = arith.constant 0 : index
      %c0_18 = arith.constant 0 : index
      %35 = vector.load %arg4[%c0_17, %c0_18] : memref<1x1xf32, #tpu.memory_space<vmem>>, vector<1x1xf32>
      %cst_19 = arith.constant 1.250000e-01 : f32
      %36 = vector.broadcast %cst_19 : f32 to vector<1x1xf32>
      %37 = arith.mulf %35, %36 : vector<1x1xf32>
      %c0_20 = arith.constant 0 : index
      %c0_21 = arith.constant 0 : index
      %38 = vector.load %arg4[%c0_20, %c0_21] : memref<1x1xf32, #tpu.memory_space<vmem>>, vector<1x1xf32>
      tpu.vector_store %arg4[%c0_20, %c0_21], %37 {strides = array<i32>} : memref<1x1xf32, #tpu.memory_space<vmem>>, vector<1x1xf32>,
    } else {
    }
    return
  }
  func.func @transform_0(%arg0: i32) -> (i32, i32) {
    %c0_i32 = arith.constant 0 : i32
    %c0_i32_0 = arith.constant 0 : i32
    return %arg0, %c0_i32 : i32, i32
  }
  func.func @transform_1(%arg0: i32) -> (i32, i32) {
    %c0_i32 = arith.constant 0 : i32
    %c0_i32_0 = arith.constant 0 : i32
    return %arg0, %c0_i32 : i32, i32
  }
  func.func @transform_2(%arg0: i32) -> (i32, i32) {
    %c0_i32 = arith.constant 0 : i32
    %c0_i32_0 = arith.constant 0 : i32
    return %arg0, %c0_i32 : i32, i32
  }
  func.func @transform_3(%arg0: i32) -> (i32, i32) {
    %c0_i32 = arith.constant 0 : i32
    %c0_i32_0 = arith.constant 0 : i32
    %c0_i32_1 = arith.constant 0 : i32
    return %c0_i32, %c0_i32_0 : i32, i32
  }
}

</mosaic_0001>

<bundles_post_ra>
// kernel: tpu_custom_call.1
= control target key start
LH: loop header
LB: loop body
LE: loop exit
PB: predicated region body
PF: predicated region fallthrough
CT: control target
= control target key end

     0   :  { %8 = vsyncpa [#allocation3], 0  ;;  %s219_s0 = inlined_call_operand.vmem [shape: f32[8,32], index: 0, kind: input, shape index: {}]   ;;  %s220_s1 = inlined_call_operand.hbm [shape: f32[8,32], index: 1, kind: input, shape index: {}]   ;;  %s221_s2 = inlined_call_operand.vmem [shape: f32[8,1], index: 2, kind: input, shape index: {}]   ;;  %s222_s3 = inlined_call_operand.hbm [shape: f32[1,1], index: 3, kind: output, shape index: {}]  }
   0x1   :  { %9 = vsyncpa [#allocation4], 0  ;;  %s163_s12 = smov [#allocation2]   ;;  %s115_s16 = scalar_lea.hbm %s220_s1, 128 }
   0x2   :  { %s18_s13 = sshll.u32 %s163_s12, 4  ;;  %p116_p0 = scmp.ne.s32.totalorder %s220_s1, %s115_s16  ;;  %s19_s13 = int_to_ptr.vmem [resolvable:$true] %s18_s13 }
   0x3   :  { %p119_p1 = scmp.lt.u32.totalorder %s115_s16, %s220_s1 }
   0x5   :  { %p121_p2 = pnand %p119_p1, %p116_p0 }
   0x7   :  { %124 = shalt.err (!%p121_p2)
}
   0x8   :  { %s125_s21 = scalar_lea.vmem %s19_s13, 128  ;;  %p130_p4 = scmp.lt.s32.totalorder %s19_s13, %s19_s13 }
   0x9   :  { %p126_p3 = scmp.ne.s32.totalorder %s19_s13, %s125_s21  ;;  %p131_p5 = scmp.lt.s32.totalorder %s125_s21, %s125_s21 }
   0xb   :  { %p132_p6 = por %p131_p5, %p130_p4 }
   0xd   :  { %p133_p7 = pnand %p132_p6, %p126_p3 }
   0xf   :  { %136 = shalt.err (!%p133_p7)
}
  0x10   :  { %21 = dma.hbm_to_vmem [thread:$0]  %s220_s1, 128, %s19_s13, [#allocation3]  }
  0x11   :  { %159 = dma.done.wait [#allocation3], 128  }
  0x12   :  { %160 = vsyncadd [#allocation3], 4294967168  ;;  %v33_v0 = vld [vmem:[%s219_s0] sm:$0xff]  ;;  %vm38_vm0 = vcmask 261120   ;;  %vm68_vm4 = vcmask 7168   ;;  %vm31_vm5 = vcmask 0  }
  0x13   :  { %v34_v1 = vld [vmem:[#allocation2] sm:$0xff]  ;;  %v164_v30 = vmov 0.0  }
  0x14   :  { %v35_v2 = vsub.f32 %v33_v0, %v34_v1  ;;  %v49_v10 = vld [vmem:[%s221_s2] sm:$0xff]  ;;  %32 = vst.msk [vmem:[#allocation5] sm:$0x1] %vm31_vm5, %v164_v30  ;;  %s165_s2 = smov [#allocation5]  }
  0x15   :  { %s95_s27 = sshll.u32 %s165_s2, 4  ;;  %s96_s27 = int_to_ptr.vmem [resolvable:$true] %s95_s27 }
  0x16   :  { %v36_v3 = vadd.f32 1e-06, %v35_v2  ;;  %s137_s28 = scalar_lea.vmem %s96_s27, 16  ;;  %s141_s29 = scalar_lea.vmem %s96_s27, 32 }
  0x17   :  { %p138_p8 = scmp.ne.s32.totalorder %s96_s27, %s137_s28  ;;  %p142_p9 = scmp.lt.s32.totalorder %s96_s27, %s96_s27 }
  0x18   :  { %v37_v4 = vmul.f32 %v36_v3, %v36_v3  ;;  %p143_p10 = scmp.lt.s32.totalorder %s141_s29, %s137_s28 }
  0x1a   :  { %v39_v5 = vsel %vm38_vm0, %v37_v4, 0.0  ;;  %p144_p11 = por %p143_p10, %p142_p9 }
  0x1b   :  { %40 = vadd.xlane.f32.xlu0 %v39_v5  ;;  %v67_v38 = vld [vmem:[#allocation5] sm:$0x1] }
  0x1c   :  { %p145_p12 = pnand %p144_p11, %p138_p8 }
  0xa8   :  { %v41_v6 = vpop.xlane.xlu0 %40 }
  0xa9   :  { %109 = vrsqrt.f32 %v41_v6  ;;  %vm44_vm1 = vcmp.eq.f32.partialorder %v41_v6, inf  ;;  %v47_v9 = vand.u32 2147483648, %v41_v6  ;;  %vm46_vm2 = vcmp.eq.f32.partialorder %v41_v6, 0.0 }
  0xb3   :  { %v110_v7 = vpop.eup %109 }
  0xb4   :  { %v43_v8 = vmul.f32 %v110_v7, %v41_v6 }
  0xb6   :  { %v45_v11 = vsel %vm44_vm1, %v41_v6, %v43_v8 }
  0xb7   :  { %v48_v12 = vsel %vm46_vm2, %v47_v9, %v45_v11 }
  0xb8   :  { %v50_v13 = vsub.f32 %v48_v12, %v49_v10 }
  0xba   :  { %v51_v14 = vmul.f32 -1.0, %v50_v13 }
  0xbc   :  { %v53_v15 = vand.u32 2147483647, %v51_v14  ;;  %v52_v26 = vmax.f32 %v51_v14, 0.0 }
  0xbe   :  { %v54_v16 = vsub.f32 0.0, %v53_v15 }
  0xc0   :  { %v55_v17 = vmul.f32 1.442695, %v54_v16 }
  0xc2   :  { %111 = vpow2.f32 %v55_v17 }
  0xcc   :  { %v112_v18 = vpop.eup %111 }
  0xcd   :  { %v57_v19 = vadd.f32 1.0, %v112_v18  ;;  %v60_v20 = vmul.f32 -0.5, %v112_v18  ;;  %v63_v22 = vand.u32 2147483647, %v112_v18 }
  0xcf   :  { %113 = vlog2.f32 %v57_v19  ;;  %v61_v21 = vadd.f32 1.0, %v60_v20  ;;  %vm64_vm3 = vcmp.lt.f32.partialorder %v63_v22, 0.0004427343 }
  0xd1   :  { %v62_v25 = vmul.f32 %v112_v18, %v61_v21 }
  0xd9   :  { %v114_v23 = vpop.eup %113 }
  0xda   :  { %v59_v24 = vmul.f32 0.6931472, %v114_v23 }
  0xdc   :  { %v65_v27 = vsel %vm64_vm3, %v62_v25, %v59_v24 }
  0xdd   :  { %v66_v28 = vadd.f32 %v65_v27, %v52_v26 }
  0xdf   :  { %v69_v29 = vsel %vm68_vm4, %v66_v28, 0.0 }
  0xe0   :  { %70 = vadd.xlane.f32.xlu0 %v69_v29 }
 0x16d   :  { %v71_v31 = vpop.xlane.xlu0 %70 }
 0x16e   :  { %v72_v32 = vrot.slane %v71_v31, 4 }
 0x170   :  { %v73_v33 = vadd.f32 %v72_v32, %v71_v31 }
 0x172   :  { %v74_v34 = vrot.slane %v73_v33, 2 }
 0x174   :  { %v75_v35 = vadd.f32 %v74_v34, %v73_v33 }
 0x176   :  { %v76_v36 = vrot.slane %v75_v35, 1 }
 0x178   :  { %v77_v37 = vadd.f32 %v76_v36, %v75_v35 }
 0x17a   :  { %104 = vpush %v77_v37 }
 0x1ab   :  { %s105_s0 = spop %104 }
 0x1ac   :  { %v79_v39 = vstv %s105_s0 }
 0x1ad   :  { %v80_v40 = vadd.f32 %v79_v39, %v67_v38 }
 0x1af   :  { %82 = vst.msk [vmem:[#allocation5] sm:$0x1] %vm31_vm5, %v80_v40 }
 0x1b6   :  { %v86_v41 = vld [vmem:[#allocation5] sm:$0x1] }
 0x1b7   :  { %v87_v42 = vmul.f32 0.125, %v86_v41 }
 0x1b9   :  { %88 = vst.msk [vmem:[#allocation5] sm:$0x1] %vm31_vm5, %v87_v42 }
 0x1ba   :  { %148 = shalt.err (!%p145_p12)
}
 0x1bb   :  { %s149_s5 = scalar_lea.hbm %s222_s3, 16 }
 0x1bc   :  { %p150_p13 = scmp.ne.s32.totalorder %s222_s3, %s149_s5  ;;  %p153_p0 = scmp.lt.u32.totalorder %s149_s5, %s222_s3 }
 0x1be   :  { %p155_p1 = pnand %p153_p0, %p150_p13 }
 0x1c0   :  { %158 = shalt.err (!%p155_p1)
}
 0x1c1   :  { %98 = dma.vmem_to_hbm [thread:$0]  %s96_s27, 16, %s222_s3, [#allocation4]  }
 0x1c2   :  { %161 = dma.done.wait [#allocation4], 16  }
 0x1c3   :  { %162 = vsyncadd [#allocation4], 4294967280 }
 0x1c4   :  { %102 = vsyncpa [#allocation3], 1 }
 0x1c5   :  { %103 = vsyncpa [#allocation4], 1 }

</bundles_post_ra>
